<compile_context>
chip_gen: v5e
topology: v5e:2x2
jax: 0.10.0
libtpu: 0.0.40
codegen_flags: <defaults>
</compile_context>

<pallas_src>
import functools
import math

import jax
import jax.numpy as jnp
from jax import lax
from jax.experimental import pallas as pl
from jax.experimental.pallas import tpu as pltpu

ACTION_BOUND = 1.0
STATE_DIM = 44
HIDDEN_DIM = 128
ACTION_DIM = 2
LANE = 128

_LOG_SQRT_2PI = 0.5 * math.log(2.0 * math.pi)


def _softplus(z):
    # matches torch.nn.functional.softplus (beta=1, threshold=20)
    return jnp.where(z > 20.0, z, jnp.log1p(jnp.exp(jnp.minimum(z, 20.0))))


def policy_kernel(x_ref, w1_ref, b1_ref, wh_ref, bh_ref, eps_ref, out_ref):
    # fc1 + relu.  x arrives batch-major (tb, S); contract the shared S axis
    # directly ((H,S) . (tb,S)^T -> (H,tb)) so the batch lands on the 128-lane
    # axis without any wrapper-side transpose copy of the largest input.
    h = lax.dot_general(
        w1_ref[...], x_ref[...],
        dimension_numbers=(((1,), (1,)), ((), ())),
        preferred_element_type=jnp.float32)
    h = jnp.maximum(h + b1_ref[...], 0.0)                              # (H, tb) f32

    # fused mu / std heads : (2A, H) @ (H, tb) -> (2A, tb)
    heads = jnp.dot(wh_ref[...], h.astype(jnp.bfloat16),
                    preferred_element_type=jnp.float32) + bh_ref[...]
    mu = heads[:ACTION_DIM, :]
    std = _softplus(heads[ACTION_DIM:, :]) + 1e-6                      # (A, tb)

    # dist = Normal(mu, std); normal_sample = dist.rsample()
    eps = eps_ref[...]                                                 # (A, tb)
    normal_sample = mu + std * eps

    # dist.log_prob(sample): (sample - mu) == std*eps, so the quadratic term
    # collapses exactly to -0.5*eps^2 (no divide, no 1/std^2 hazard at the floor)
    log_prob = -0.5 * eps * eps - jnp.log(std) - _LOG_SQRT_2PI

    action = jnp.tanh(normal_sample)
    # Reproduce the original module exactly (tanh applied twice on purpose):
    #   log_prob -= log(1 - tanh(action)^2 + 1e-7)
    log_prob = log_prob - jnp.log(1.0 - jnp.tanh(action) ** 2 + 1e-7)

    # single fused (2A, tb) store: rows [0:A) = action, rows [A:2A) = log_prob
    out_ref[...] = jnp.concatenate([action * ACTION_BOUND, log_prob], axis=0)


def _cdiv(a, b):
    return (a + b - 1) // b


@functools.partial(jax.jit, static_argnames=("block_b",))
def policy_net_continuous(x, params, eps, *, block_b=4096):
    """x: (B, STATE_DIM), eps: (B, ACTION_DIM) -> (action, log_prob), each (B, ACTION_DIM) f32."""
    w1, b1, wh, bh = params
    B = x.shape[0]

    # ---- tiling: lane-dense (multiple-of-128) batch tiles; >=2 grid steps
    #      whenever the batch spans >=2 lane tiles (v7x has 2 TensorCores). ----
    n_lane_tiles = _cdiv(B, LANE)
    n_steps = max(_cdiv(n_lane_tiles * LANE, block_b),
                  2 if n_lane_tiles >= 2 else 1)
    tiles_per_step = _cdiv(n_lane_tiles, n_steps)
    tb = tiles_per_step * LANE
    n_steps = _cdiv(n_lane_tiles, tiles_per_step)
    Bp = tb * n_steps

    # bf16 matmul operands (MXU-native rate, half the HBM bytes for x);
    # biases and the transcendental tail stay f32.
    x_p = x.astype(jnp.bfloat16)                                       # (B, S) batch-major, no transpose copy
    w1b = w1.astype(jnp.bfloat16)
    whb = wh.astype(jnp.bfloat16)
    b1f = b1.astype(jnp.float32)
    bhf = bh.astype(jnp.float32)
    epsT = eps.T.astype(jnp.float32)                                   # (A, B) -- tiny
    if Bp != B:
        x_p = jnp.pad(x_p, ((0, Bp - B), (0, 0)))
        epsT = jnp.pad(epsT, ((0, 0), (0, Bp - B)))

    const_spec = lambda shape: pl.BlockSpec(shape, lambda i: (0, 0))   # VMEM-resident weights

    flops = 2 * Bp * (STATE_DIM * HIDDEN_DIM + HIDDEN_DIM * 2 * ACTION_DIM)
    transcendentals = 6 * Bp * ACTION_DIM
    bytes_accessed = (2 * (x_p.size + w1b.size + whb.size)
                      + 4 * (b1f.size + bhf.size + epsT.size + 2 * ACTION_DIM * Bp))

    out = pl.pallas_call(
        policy_kernel,
        out_shape=jax.ShapeDtypeStruct((2 * ACTION_DIM, Bp), jnp.float32),
        grid=(n_steps,),
        in_specs=[
            pl.BlockSpec((tb, STATE_DIM), lambda i: (i, 0)),   # x   (batch-major)
            const_spec(w1b.shape),                             # w1  (H, S)
            const_spec(b1f.shape),                             # b1  (H, 1)
            const_spec(whb.shape),                             # w_heads (2A, H)
            const_spec(bhf.shape),                             # b_heads (2A, 1)
            pl.BlockSpec((ACTION_DIM, tb), lambda i: (0, i)),  # epsT
        ],
        out_specs=pl.BlockSpec((2 * ACTION_DIM, tb), lambda i: (0, i)),
        compiler_params=pltpu.CompilerParams(
            dimension_semantics=("parallel",),
            # generous headroom even for very fat tiles on v5e's 16 MiB default scope
            vmem_limit_bytes=32 * 1024 * 1024),
        cost_estimate=pl.CostEstimate(
            flops=flops,
            transcendentals=transcendentals,
            bytes_accessed=bytes_accessed),
    )(x_p, w1b, b1f, whb, bhf, epsT)

    action = out[:ACTION_DIM, :B].T
    log_prob = out[ACTION_DIM:, :B].T
    return action, log_prob


def init_params(key):
    # torch.nn.Linear default init: U(-1/sqrt(fan_in), 1/sqrt(fan_in)),
    # stored in torch-native (out, in) layout for the lane-dense dataflow.
    ks = jax.random.split(key, 6)

    def lin(kw, kb, fan_in, fan_out):
        bound = 1.0 / math.sqrt(fan_in)
        w = jax.random.uniform(kw, (fan_out, fan_in), jnp.float32, -bound, bound)
        b = jax.random.uniform(kb, (fan_out, 1), jnp.float32, -bound, bound)
        return w, b

    w1, b1 = lin(ks[0], ks[1], STATE_DIM, HIDDEN_DIM)
    wmu, bmu = lin(ks[2], ks[3], HIDDEN_DIM, ACTION_DIM)
    wstd, bstd = lin(ks[4], ks[5], HIDDEN_DIM, ACTION_DIM)
    # Fuse fc_mu / fc_std into a single head matmul.
    wh = jnp.concatenate([wmu, wstd], axis=0)   # (2A, H)
    bh = jnp.concatenate([bmu, bstd], axis=0)   # (2A, 1)
    return (w1, b1, wh, bh)


if __name__ == "__main__":
    key = jax.random.PRNGKey(0)
    k_param, k_x, k_eps = jax.random.split(key, 3)

    B = 8
    params = init_params(k_param)
    x = jax.random.normal(k_x, (B, STATE_DIM), jnp.float32)
    # rsample noise (reparameterization trick): eps ~ N(0, 1), generated on host
    # TODO(synk): could be drawn in-kernel via pltpu.prng_seed/stateful_normal if
    # bit-parity with the host RNG stream is not required.
    eps = jax.random.normal(k_eps, (B, ACTION_DIM), jnp.float32)

    action, log_prob = policy_net_continuous(x, params, eps)
    jax.block_until_ready((action, log_prob))

    # Pure-JAX f32 reference of the same forward math (sanity check).
    def ref(x, params, eps):
        w1, b1, wh, bh = params
        h = jnp.maximum(x @ w1.T + b1[:, 0], 0.0)
        heads = h @ wh.T + bh[:, 0]
        mu, std_pre = heads[:, :ACTION_DIM], heads[:, ACTION_DIM:]
        std = jax.nn.softplus(std_pre) + 1e-6
        sample = mu + std * eps
        lp = (-((sample - mu) ** 2) / (2.0 * std * std) - jnp.log(std)
              - 0.5 * math.log(2.0 * math.pi))
        a = jnp.tanh(sample)
        lp = lp - jnp.log(1.0 - jnp.tanh(a) ** 2 + 1e-7)
        return a * ACTION_BOUND, lp

    a_ref, lp_ref = ref(x, params, eps)
    assert action.shape == (B, ACTION_DIM) and log_prob.shape == (B, ACTION_DIM)
    assert bool(jnp.all(jnp.isfinite(action))) and bool(jnp.all(jnp.isfinite(log_prob)))
    # tolerances account for bf16 matmul operands (f32 accumulate, f32 tail)
    assert jnp.allclose(action, a_ref, atol=3e-2, rtol=3e-2)
    assert jnp.allclose(log_prob, lp_ref, atol=3e-2, rtol=3e-2)
    print("KERNEL_OK")
</pallas_src>

<mosaic_0001>
module attributes {stable_mosaic.version = 11 : i64} {
  func.func @policy_kernel(%arg0: i32, %arg1: memref<128x44xbf16, #tpu.memory_space<vmem>>, %arg2: memref<128x44xbf16, #tpu.memory_space<vmem>>, %arg3: memref<128x1xf32, #tpu.memory_space<vmem>>, %arg4: memref<4x128xbf16, #tpu.memory_space<vmem>>, %arg5: memref<4x1xf32, #tpu.memory_space<vmem>>, %arg6: memref<2x128xf32, #tpu.memory_space<vmem>>, %arg7: memref<4x128xf32, #tpu.memory_space<vmem>>) attributes {dimension_semantics = [#tpu.dimension_semantics<parallel>], iteration_bounds = array<i64: 1>, scalar_prefetch = 0 : i64, scratch_operands = 0 : i64, tpu.core_type = #tpu.core_type<tc>, window_params = [{transform_indices = @transform_0, window_bounds = array<i64: 128, 44>}, {pipeline_mode = #tpu.pipeline_mode<synchronous>, transform_indices = @transform_1, window_bounds = array<i64: 128, 44>}, {pipeline_mode = #tpu.pipeline_mode<synchronous>, transform_indices = @transform_2, window_bounds = array<i64: 128, 1>}, {pipeline_mode = #tpu.pipeline_mode<synchronous>, transform_indices = @transform_3, window_bounds = array<i64: 4, 128>}, {pipeline_mode = #tpu.pipeline_mode<synchronous>, transform_indices = @transform_4, window_bounds = array<i64: 4, 1>}, {transform_indices = @transform_5, window_bounds = array<i64: 2, 128>}, {transform_indices = @transform_6, window_bounds = array<i64: 4, 128>}]} {
    %c0 = arith.constant 0 : index
    %c0_0 = arith.constant 0 : index
    %0 = vector.load %arg2[%c0, %c0_0] : memref<128x44xbf16, #tpu.memory_space<vmem>>, vector<128x44xbf16>
    %c0_1 = arith.constant 0 : index
    %c0_2 = arith.constant 0 : index
    %1 = vector.load %arg1[%c0_1, %c0_2] : memref<128x44xbf16, #tpu.memory_space<vmem>>, vector<128x44xbf16>
    %cst = arith.constant dense<0.000000e+00> : vector<128x128xf32>
    %2 = tpu.matmul %0, %1, %cst {dimension_numbers = #tpu.dot_dimension_numbers<[1], [1], [0], [0], [0, 0, 1, 0], [], []>} : vector<128x44xbf16>, vector<128x44xbf16>, vector<128x128xf32> -> vector<128x128xf32>
    %c0_3 = arith.constant 0 : index
    %c0_4 = arith.constant 0 : index
    %3 = vector.load %arg3[%c0_3, %c0_4] : memref<128x1xf32, #tpu.memory_space<vmem>>, vector<128x1xf32>
    %4 = vector.broadcast %3 : vector<128x1xf32> to vector<128x128xf32>
    %5 = arith.addf %2, %4 : vector<128x128xf32>
    %cst_5 = arith.constant 0.000000e+00 : f32
    %6 = vector.broadcast %cst_5 : f32 to vector<128x128xf32>
    %7 = arith.maximumf %5, %6 : vector<128x128xf32>
    %c0_6 = arith.constant 0 : index
    %c0_7 = arith.constant 0 : index
    %8 = vector.load %arg4[%c0_6, %c0_7] : memref<4x128xbf16, #tpu.memory_space<vmem>>, vector<4x128xbf16>
    %9 = arith.truncf %7 : vector<128x128xf32> to vector<128x128xbf16>
    %cst_8 = arith.constant dense<0.000000e+00> : vector<4x128xf32>
    %10 = tpu.matmul %8, %9, %cst_8 {dimension_numbers = #tpu.dot_dimension_numbers<[1], [0], [0], [1], [0, 0, 1, 1], [], []>} : vector<4x128xbf16>, vector<128x128xbf16>, vector<4x128xf32> -> vector<4x128xf32>
    %c0_9 = arith.constant 0 : index
    %c0_10 = arith.constant 0 : index
    %11 = vector.load %arg5[%c0_9, %c0_10] : memref<4x1xf32, #tpu.memory_space<vmem>>, vector<4x1xf32>
    %12 = vector.broadcast %11 : vector<4x1xf32> to vector<4x128xf32>
    %13 = arith.addf %10, %12 : vector<4x128xf32>
    %14 = vector.extract_strided_slice %13 {offsets = [0, 0], sizes = [2, 128], strides = [1, 1]} : vector<4x128xf32> to vector<2x128xf32>
    %15 = vector.extract_strided_slice %13 {offsets = [2, 0], sizes = [2, 128], strides = [1, 1]} : vector<4x128xf32> to vector<2x128xf32>
    %cst_11 = arith.constant 2.000000e+01 : f32
    %16 = vector.broadcast %cst_11 : f32 to vector<2x128xf32>
    %17 = arith.cmpf ogt, %15, %16 : vector<2x128xf32>
    %cst_12 = arith.constant 2.000000e+01 : f32
    %18 = vector.broadcast %cst_12 : f32 to vector<2x128xf32>
    %19 = arith.minimumf %15, %18 : vector<2x128xf32>
    %20 = math.exp %19 : vector<2x128xf32>
    %21 = math.log1p %20 : vector<2x128xf32>
    %22 = arith.select %17, %15, %21 : vector<2x128xi1>, vector<2x128xf32>
    %cst_13 = arith.constant 9.99999997E-7 : f32
    %23 = vector.broadcast %cst_13 : f32 to vector<2x128xf32>
    %24 = arith.addf %22, %23 : vector<2x128xf32>
    %c0_14 = arith.constant 0 : index
    %c0_15 = arith.constant 0 : index
    %25 = vector.load %arg6[%c0_14, %c0_15] : memref<2x128xf32, #tpu.memory_space<vmem>>, vector<2x128xf32>
    %26 = arith.mulf %24, %25 : vector<2x128xf32>
    %27 = arith.addf %14, %26 : vector<2x128xf32>
    %cst_16 = arith.constant -5.000000e-01 : f32
    %28 = vector.broadcast %cst_16 : f32 to vector<2x128xf32>
    %29 = arith.mulf %28, %25 : vector<2x128xf32>
    %30 = arith.mulf %29, %25 : vector<2x128xf32>
    %31 = math.log %24 : vector<2x128xf32>
    %32 = arith.subf %30, %31 : vector<2x128xf32>
    %cst_17 = arith.constant 0.918938517 : f32
    %33 = vector.broadcast %cst_17 : f32 to vector<2x128xf32>
    %34 = arith.subf %32, %33 : vector<2x128xf32>
    %35 = math.tanh %27 : vector<2x128xf32>
    %36 = math.tanh %35 : vector<2x128xf32>
    %37 = arith.mulf %36, %36 : vector<2x128xf32>
    %cst_18 = arith.constant 1.000000e+00 : f32
    %38 = vector.broadcast %cst_18 : f32 to vector<2x128xf32>
    %39 = arith.subf %38, %37 : vector<2x128xf32>
    %cst_19 = arith.constant 1.000000e-07 : f32
    %40 = vector.broadcast %cst_19 : f32 to vector<2x128xf32>
    %41 = arith.addf %39, %40 : vector<2x128xf32>
    %42 = math.log %41 : vector<2x128xf32>
    %43 = arith.subf %34, %42 : vector<2x128xf32>
    %cst_20 = arith.constant 1.000000e+00 : f32
    %44 = vector.broadcast %cst_20 : f32 to vector<2x128xf32>
    %45 = arith.mulf %35, %44 : vector<2x128xf32>
    %46 = tpu.concatenate %45, %43 in 0 : vector<2x128xf32>, vector<2x128xf32> -> vector<4x128xf32>
    %c0_21 = arith.constant 0 : index
    %c0_22 = arith.constant 0 : index
    %47 = vector.load %arg7[%c0_21, %c0_22] : memref<4x128xf32, #tpu.memory_space<vmem>>, vector<4x128xf32>
    tpu.vector_store %arg7[%c0_21, %c0_22], %46 {strides = array<i32>} : memref<4x128xf32, #tpu.memory_space<vmem>>, vector<4x128xf32>,
    return
  }
  func.func @transform_0(%arg0: i32) -> (i32, i32) {
    %c0_i32 = arith.constant 0 : i32
    %c0_i32_0 = arith.constant 0 : i32
    return %arg0, %c0_i32 : i32, i32
  }
  func.func @transform_1(%arg0: i32) -> (i32, i32) {
    %c0_i32 = arith.constant 0 : i32
    %c0_i32_0 = arith.constant 0 : i32
    %c0_i32_1 = arith.constant 0 : i32
    return %c0_i32, %c0_i32_0 : i32, i32
  }
  func.func @transform_2(%arg0: i32) -> (i32, i32) {
    %c0_i32 = arith.constant 0 : i32
    %c0_i32_0 = arith.constant 0 : i32
    %c0_i32_1 = arith.constant 0 : i32
    return %c0_i32, %c0_i32_0 : i32, i32
  }
  func.func @transform_3(%arg0: i32) -> (i32, i32) {
    %c0_i32 = arith.constant 0 : i32
    %c0_i32_0 = arith.constant 0 : i32
    %c0_i32_1 = arith.constant 0 : i32
    return %c0_i32, %c0_i32_0 : i32, i32
  }
  func.func @transform_4(%arg0: i32) -> (i32, i32) {
    %c0_i32 = arith.constant 0 : i32
    %c0_i32_0 = arith.constant 0 : i32
    %c0_i32_1 = arith.constant 0 : i32
    return %c0_i32, %c0_i32_0 : i32, i32
  }
  func.func @transform_5(%arg0: i32) -> (i32, i32) {
    %c0_i32 = arith.constant 0 : i32
    %c0_i32_0 = arith.constant 0 : i32
    return %c0_i32, %arg0 : i32, i32
  }
  func.func @transform_6(%arg0: i32) -> (i32, i32) {
    %c0_i32 = arith.constant 0 : i32
    %c0_i32_0 = arith.constant 0 : i32
    return %c0_i32, %arg0 : i32, i32
  }
}

</mosaic_0001>

<bundles_post_ra>
// kernel: policy_net_continuous.1
= control target key start
LH: loop header
LB: loop body
LE: loop exit
PB: predicated region body
PF: predicated region fallthrough
CT: control target
= control target key end

     0   :  { %vm231_vm0 = vcmask 359424   ;;  %v553_v13 = vmov 0   ;;  %vm417_vm3 = vcmask 1041408   ;;  %s713_s0 = inlined_call_operand.vmem [shape: bf16[128,44], index: 0, kind: input, shape index: {}]   ;;  %s714_s2 = inlined_call_operand.vmem [shape: f32[128,1], index: 2, kind: input, shape index: {}]   ;;  %s715_s1 = inlined_call_operand.vmem [shape: bf16[128,44], index: 1, kind: input, shape index: {}]   ;;  %s716_s4 = inlined_call_operand.vmem [shape: f32[4,1], index: 4, kind: input, shape index: {}]   ;;  %s717_s3 = inlined_call_operand.vmem [shape: bf16[4,128], index: 3, kind: input, shape index: {}]   ;;  %s718_s5 = inlined_call_operand.vmem [shape: f32[2,128], index: 5, kind: input, shape index: {}]   ;;  %s719_s6 = inlined_call_operand.vmem [shape: f32[4,128], index: 6, kind: output, shape index: {}]  }
   0x1   :  { %v512_v0 = vld [vmem:[%s713_s0 + $0x38] sm:$0xff]  ;;  %v511_v2 = vld [vmem:[%s713_s0 + $0x30] sm:$0xff]  ;;  %v510_v4 = vld [vmem:[%s713_s0 + $0x28] sm:$0xff]  ;;  %538 = vset.pattern.permute.xlu0 %v553_v13  ;;  %539 = vset.pattern.permute.xlu1 %v553_v13 }
   0x2   :  { %v278_v1 = vsel %vm231_vm0, %v512_v0, 0  ;;  %v275_v3 = vsel %vm231_vm0, %v511_v2, 0  ;;  %v272_v5 = vsel %vm231_vm0, %v510_v4, 0  ;;  %v509_v6 = vld [vmem:[%s713_s0 + $0x20] sm:$0xff]  ;;  %v508_v8 = vld [vmem:[%s713_s0 + $0x18] sm:$0xff]  ;;  %v69_v10 = vld [vmem:[%s714_s2 + $0x70] sm:$0xff]  ;;  %540 = vset.pattern.permute.xlu2 %v553_v13 }
   0x3   :  { %515 = vmatpush.bf16.xpose.msra.mxu3 %v278_v1  ;;  %514 = vmatpush.bf16.xpose.msra.mxu2 %v278_v1  ;;  %v269_v7 = vsel %vm231_vm0, %v509_v6, 0  ;;  %v266_v9 = vsel %vm231_vm0, %v508_v8, 0  ;;  %v67_v11 = vld [vmem:[%s714_s2 + $0x60] sm:$0xff]  ;;  %v507_v12 = vld [vmem:[%s713_s0 + $0x10] sm:$0xff]  ;;  %v70_v15 = vld [vmem:[%s714_s2 + $0x78] sm:$0xff] }
   0x4   :  { %513 = vmatpush.bf16.xpose.msra.mxu1 %v278_v1  ;;  %280 = vmatpush.bf16.xpose.msra.mxu0 %v278_v1  ;;  %v263_v14 = vsel %vm231_vm0, %v507_v12, 0  ;;  %v506_v16 = vld [vmem:[%s713_s0 + $0x8] sm:$0xff]  ;;  %v63_v19 = vld [vmem:[%s714_s2 + $0x40] sm:$0xff]  ;;  %v62_v23 = vld [vmem:[%s714_s2 + $0x38] sm:$0xff] }
   0x5   :  { %143 = vperm.xlu0 %538, %v69_v10   ;;  %133 = vperm.xlu1 %539, %v67_v11   ;;  %v260_v17 = vsel %vm231_vm0, %v506_v16, 0  ;;  %v68_v18 = vld [vmem:[%s714_s2 + $0x68] sm:$0xff]  ;;  %v505_v20 = vld [vmem:[%s713_s0] sm:$0xff]  ;;  %v500_v25 = vld [vmem:[%s715_s1 + $0x18] sm:$0xff] }
   0x6   :  { %v257_v21 = vsel %vm231_vm0, %v505_v20, 0  ;;  %v64_v22 = vld [vmem:[%s714_s2 + $0x48] sm:$0xff]  ;;  %v497_v27 = vld [vmem:[%s715_s1] sm:$0xff]  ;;  %v65_v29 = vld [vmem:[%s714_s2 + $0x50] sm:$0xff] }
   0x7   :  { %v502_v24 = vld [vmem:[%s715_s1 + $0x28] sm:$0xff]  ;;  %v59_v28 = vld [vmem:[%s714_s2 + $0x20] sm:$0xff]  ;;  %v57_v30 = vld [vmem:[%s714_s2 + $0x10] sm:$0xff]  ;;  %123 = vperm.xlu2 %540, %v65_v29  }
   0x8   :  { %v498_v26 = vld [vmem:[%s715_s1 + $0x8] sm:$0xff]  ;;  %v66_v31 = vld [vmem:[%s714_s2 + $0x58] sm:$0xff]  ;;  %v503_v34 = vld [vmem:[%s715_s1 + $0x30] sm:$0xff] }
   0x9   :  { %v58_v32 = vld [vmem:[%s714_s2 + $0x18] sm:$0xff]  ;;  %v56_v33 = vld [vmem:[%s714_s2 + $0x8] sm:$0xff]  ;;  %v501_v35 = vld [vmem:[%s715_s1 + $0x20] sm:$0xff] }
   0xa   :  { %v499_v36 = vld [vmem:[%s715_s1 + $0x10] sm:$0xff]  ;;  %v354_v38 = vld [vmem:[%s716_s4] sm:$0xf]  ;;  %v60_v39 = vld [vmem:[%s714_s2 + $0x28] sm:$0xff] }
   0xb   :  { %518 = vmatpush.bf16.xpose.msra.mxu3 %v275_v3  ;;  %517 = vmatpush.bf16.xpose.msra.mxu2 %v275_v3  ;;  %v61_v37 = vld [vmem:[%s714_s2 + $0x30] sm:$0xff]  ;;  %v504_v40 = vld [vmem:[%s715_s1 + $0x38] sm:$0xff]  ;;  %v55_v41 = vld [vmem:[%s714_s2] sm:$0xff] }
   0xc   :  { %516 = vmatpush.bf16.xpose.msra.mxu1 %v275_v3  ;;  %281 = vmatpush.bf16.xpose.msra.mxu0 %v275_v3 }
   0xd   :  { %148 = vperm.xlu0 %538, %v70_v15   ;;  %138 = vperm.xlu1 %539, %v68_v18  }
   0xf   :  { %128 = vperm.xlu2 %540, %v66_v31  }
  0x13   :  { %521 = vmatpush.bf16.xpose.msra.mxu3 %v272_v5  ;;  %520 = vmatpush.bf16.xpose.msra.mxu2 %v272_v5 }
  0x14   :  { %519 = vmatpush.bf16.xpose.msra.mxu1 %v272_v5  ;;  %282 = vmatpush.bf16.xpose.msra.mxu0 %v272_v5 }
  0x15   :  { %113 = vperm.xlu0 %538, %v63_v19   ;;  %118 = vperm.xlu1 %539, %v64_v22  }
  0x17   :  { %103 = vperm.xlu2 %540, %v61_v37  }
  0x1b   :  { %524 = vmatpush.bf16.xpose.msra.mxu3 %v269_v7  ;;  %523 = vmatpush.bf16.xpose.msra.mxu2 %v269_v7 }
  0x1c   :  { %522 = vmatpush.bf16.xpose.msra.mxu1 %v269_v7  ;;  %283 = vmatpush.bf16.xpose.msra.mxu0 %v269_v7 }
  0x1d   :  { %108 = vperm.xlu0 %538, %v62_v23   ;;  %93 = vperm.xlu1 %539, %v59_v28  }
  0x1f   :  { %98 = vperm.xlu2 %540, %v60_v39  }
  0x23   :  { %527 = vmatpush.bf16.xpose.msra.mxu3 %v266_v9  ;;  %526 = vmatpush.bf16.xpose.msra.mxu2 %v266_v9 }
  0x24   :  { %525 = vmatpush.bf16.xpose.msra.mxu1 %v266_v9  ;;  %284 = vmatpush.bf16.xpose.msra.mxu0 %v266_v9 }
  0x25   :  { %83 = vperm.xlu0 %538, %v57_v30   ;;  %88 = vperm.xlu1 %539, %v58_v32  }
  0x27   :  { %73 = vperm.xlu2 %540, %v55_v41  }
  0x2b   :  { %530 = vmatpush.bf16.xpose.msra.mxu3 %v263_v14  ;;  %529 = vmatpush.bf16.xpose.msra.mxu2 %v263_v14 }
  0x2c   :  { %528 = vmatpush.bf16.xpose.msra.mxu1 %v263_v14  ;;  %285 = vmatpush.bf16.xpose.msra.mxu0 %v263_v14 }
  0x2d   :  { %78 = vperm.xlu0 %538, %v56_v33   ;;  %357 = vperm.xlu1 %539, %v354_v38  }
  0x33   :  { %533 = vmatpush.bf16.xpose.msra.mxu3 %v260_v17  ;;  %532 = vmatpush.bf16.xpose.msra.mxu2 %v260_v17 }
  0x34   :  { %531 = vmatpush.bf16.xpose.msra.mxu1 %v260_v17  ;;  %286 = vmatpush.bf16.xpose.msra.mxu0 %v260_v17 }
  0x3b   :  { %536 = vmatpush.bf16.xpose.msra.mxu3 %v257_v21  ;;  %535 = vmatpush.bf16.xpose.msra.mxu2 %v257_v21 }
  0x3c   :  { %534 = vmatpush.bf16.xpose.msra.mxu1 %v257_v21  ;;  %287 = vmatpush.bf16.xpose.msra.mxu0 %v257_v21 }
  0x42   :  { %493 = vmatmul.msk.bf16.vlgmr.msra.gmra.mxu3 %vm231_vm0, %v502_v24  ;;  %491 = vmatmul.msk.bf16.vlgmr.msra.gmra.mxu2 %vm231_vm0, %v500_v25 }
  0x43   :  { %489 = vmatmul.msk.bf16.vlgmr.msra.gmra.mxu1 %vm231_vm0, %v498_v26  ;;  %488 = vmatmul.msk.bf16.vlgmr.msra.gmra.mxu0 %vm231_vm0, %v497_v27 }
  0x52   :  { %494 = vmatmul.msk.bf16.gmra.mxu3 %vm231_vm0, %v503_v34  ;;  %492 = vmatmul.msk.bf16.gmra.mxu2 %vm231_vm0, %v501_v35 }
  0x53   :  { %490 = vmatmul.msk.bf16.gmra.mxu1 %vm231_vm0, %v499_v36 }
  0x61   :  { %v124_v48 = vpop.permute.xlu2 %123 }
  0x62   :  { %495 = vmatmul.msk.bf16.gmra.mxu3 %vm231_vm0, %v504_v40 }
  0x69   :  { %v129_v54 = vpop.permute.xlu2 %128 }
  0x71   :  { %v104_v62 = vpop.permute.xlu2 %103 }
  0x77   :  { %v144_v44 = vpop.permute.xlu0 %143  ;;  %v134_v47 = vpop.permute.xlu1 %133 }
  0x79   :  { %v99_v18 = vpop.permute.xlu2 %98 }
  0x7f   :  { %v149_v49 = vpop.permute.xlu0 %148  ;;  %v139_v53 = vpop.permute.xlu1 %138 }
  0x81   :  { %v74_v36 = vpop.permute.xlu2 %73 }
  0x87   :  { %v114_v55 = vpop.permute.xlu0 %113  ;;  %v119_v60 = vpop.permute.xlu1 %118 }
  0x8f   :  { %v109_v1 = vpop.permute.xlu0 %108  ;;  %v94_v16 = vpop.permute.xlu1 %93 }
  0x97   :  { %v84_v20 = vpop.permute.xlu0 %83  ;;  %v89_v33 = vpop.permute.xlu1 %88 }
  0x9f   :  { %v79_v39 = vpop.permute.xlu0 %78 }
  0xc0   :  { %v294_v50 = vpop.f32.mrf.mxu1  ;;  %v289_v21 = vpop.f32.mrf.mxu0 }
  0xc1   :  { %v295_v32 = vadd.f32 %v294_v50, %v84_v20  ;;  %v290_v41 = vadd.f32 %v289_v21, %v74_v36  ;;  %v345_v50 = vld [vmem:[%s717_s3] sm:$0x3] }
  0xc5   :  { %v314_v42 = vpop.f32.mrf.mxu3  ;;  %v304_v45 = vpop.f32.mrf.mxu2 }
  0xc6   :  { %v315_v10 = vadd.f32 %v314_v42, %v124_v48  ;;  %v305_v19 = vadd.f32 %v304_v45, %v104_v62  ;;  %v331_v42 = vmax.f32 %v295_v32, 0.0 }
  0xc8   :  { %v296_v57 = vpop.f32.mrf.mxu1  ;;  %v339_v17 = vmax.f32 %v315_v10, 0.0  ;;  %v335_v27 = vmax.f32 %v305_v19, 0.0  ;;  %v291_v40 = vpop.f32.mrf.mxu0 }
  0xc9   :  { %v297_v34 = vadd.f32 %v296_v57, %v89_v33 }
  0xcd   :  { %v316_v43 = vpop.f32.mrf.mxu3  ;;  %v306_v52 = vpop.f32.mrf.mxu2 }
  0xce   :  { %v317_v6 = vadd.f32 %v316_v43, %v129_v54  ;;  %v307_v22 = vadd.f32 %v306_v52, %v109_v1  ;;  %v332_v43 = vmax.f32 %v297_v34, 0.0 }
  0xd0   :  { %v299_v5 = vpop.f32.mrf.mxu1  ;;  %v340_v12 = vmax.f32 %v317_v6, 0.0  ;;  %v336_v28 = vmax.f32 %v307_v22, 0.0  ;;  %v347_v48 = vpack.c.bf16 %v332_v43, %v331_v42 }
  0xd1   :  { %v300_v29 = vadd.f32 %v299_v5, %v94_v16 }
  0xd2   :  { %v351_v25 = vpack.c.bf16 %v340_v12, %v339_v17  ;;  %v349_v38 = vpack.c.bf16 %v336_v28, %v335_v27 }
  0xd3   :  { %v333_v35 = vmax.f32 %v300_v29, 0.0 }
  0xd5   :  { %v319_v46 = vpop.f32.mrf.mxu3  ;;  %v309_v58 = vpop.f32.mrf.mxu2 }
  0xd6   :  { %v320_v2 = vadd.f32 %v319_v46, %v134_v47  ;;  %v310_v13 = vadd.f32 %v309_v58, %v114_v55  ;;  %v329_v46 = vmax.f32 %v290_v41, 0.0 }
  0xd8   :  { %v341_v11 = vmax.f32 %v320_v2, 0.0  ;;  %v337_v23 = vmax.f32 %v310_v13, 0.0  ;;  %v301_v26 = vpop.f32.mrf.mxu1 }
  0xd9   :  { %v302_v30 = vadd.f32 %v301_v26, %v99_v18 }
  0xdb   :  { %v334_v37 = vmax.f32 %v302_v30, 0.0 }
  0xdd   :  { %v321_v51 = vpop.f32.mrf.mxu3  ;;  %v311_v9 = vpop.f32.mrf.mxu2  ;;  %v348_v45 = vpack.c.bf16 %v334_v37, %v333_v35 }
  0xde   :  { %v322_v63 = vadd.f32 %v321_v51, %v139_v53  ;;  %v312_v14 = vadd.f32 %v311_v9, %v119_v60  ;;  %v358_v51 = vpop.permute.xlu1 %357 }
  0xe0   :  { %v342_v7 = vmax.f32 %v322_v63, 0.0  ;;  %v338_v24 = vmax.f32 %v312_v14, 0.0  ;;  %v388_v63 = vld [vmem:[%s718_s5] sm:$0x3] }
  0xe1   :  { %v397_v13 = vmul.f32 -0.5, %v388_v63 }
  0xe2   :  { %v352_v15 = vpack.c.bf16 %v342_v7, %v341_v11  ;;  %v350_v31 = vpack.c.bf16 %v338_v24, %v337_v23 }
  0xe3   :  { %v398_v17 = vmul.f32 %v397_v13, %v388_v63 }
  0xe5   :  { %v324_v56 = vpop.f32.mrf.mxu3 }
  0xe6   :  { %v325_v59 = vadd.f32 %v324_v56, %v144_v44  ;;  %v292_v44 = vadd.f32 %v291_v40, %v79_v39 }
  0xe8   :  { %v343_v3 = vmax.f32 %v325_v59, 0.0  ;;  %v330_v47 = vmax.f32 %v292_v44, 0.0 }
  0xed   :  { %v326_v61 = vpop.f32.mrf.mxu3 }
  0xee   :  { %v327_v0 = vadd.f32 %v326_v61, %v149_v49  ;;  %v346_v49 = vpack.c.bf16 %v330_v47, %v329_v46 }
  0xf0   :  { %v344_v4 = vmax.f32 %v327_v0, 0.0 }
  0xf2   :  { %v353_v8 = vpack.c.bf16 %v344_v4, %v343_v3  ;;  %v390_v3 = vrot.slane %v388_v63, 6 }
  0xf4   :  { %360 = vmatpush.bf16.msrb.mxu1 %v353_v8 }
  0xf8   :  { %361 = vmatpush.bf16.msrb.mxu1 %v352_v15 }
  0xfc   :  { %362 = vmatpush.bf16.msrb.mxu1 %v351_v25 }
 0x100   :  { %363 = vmatpush.bf16.msrb.mxu1 %v350_v31 }
 0x104   :  { %364 = vmatpush.bf16.msrb.mxu1 %v349_v38 }
 0x108   :  { %365 = vmatpush.bf16.msrb.mxu1 %v348_v45 }
 0x10c   :  { %366 = vmatpush.bf16.msrb.mxu1 %v347_v48 }
 0x110   :  { %367 = vmatpush.bf16.msrb.mxu1 %v346_v49 }
 0x113   :  { %368 = vmatmul.bf16.vlgmr.msrb.gmra.mxu1 %v345_v50 }
 0x190   :  { %v369_v52 = vpop.f32.mrf.mxu1 }
 0x191   :  { %v370_v53 = vadd.f32 %v369_v52, %v358_v51 }
 0x193   :  { %v374_v54 = vmin.f32 %v370_v53, 20.0  ;;  %vm373_vm2 = vcmp.gt.f32.partialorder %v370_v53, 20.0 }
 0x195   :  { %v375_v55 = vmul.f32 1.442695, %v374_v54 }
 0x197   :  { %541 = vpow2.f32 %v375_v55 }
 0x198   :  { %v371_v56 = vpop.f32.mrf.mxu1 }
 0x19d   :  { %v542_v57 = vpop.eup %541 }
 0x19e   :  { %v377_v58 = vadd.f32 1.0, %v542_v57  ;;  %v380_v59 = vmul.f32 -0.5, %v542_v57  ;;  %v383_v61 = vand.u32 2147483647, %v542_v57 }
 0x1a0   :  { %543 = vlog2.f32 %v377_v58  ;;  %v381_v60 = vadd.f32 1.0, %v380_v59  ;;  %vm384_vm1 = vcmp.lt.f32.partialorder %v383_v61, 0.0004427343 }
 0x1a2   :  { %v382_v1 = vmul.f32 %v542_v57, %v381_v60 }
 0x1a6   :  { %v544_v62 = vpop.eup %543 }
 0x1a7   :  { %v379_v0 = vmul.f32 0.6931472, %v544_v62 }
 0x1a9   :  { %v385_v2 = vsel %vm384_vm1, %v382_v1, %v379_v0 }
 0x1aa   :  { %v386_v4 = vsel %vm373_vm2, %v370_v53, %v385_v2 }
 0x1ab   :  { %v387_v5 = vadd.f32 1e-06, %v386_v4 }
 0x1ad   :  { %v392_v6 = vmul.f32 %v390_v3, %v387_v5 }
 0x1af   :  { %v394_v7 = vrot.slane %v392_v6, 2 }
 0x1b1   :  { %v396_v8 = vadd.f32 %v394_v7, %v370_v53 }
 0x1b3   :  { %545 = vtanh.f32 %v396_v8 }
 0x1b4   :  { %547 = vlog2.f32 %v387_v5 }
 0x1b9   :  { %v546_v9 = vpop.eup %545 }
 0x1ba   :  { %549 = vtanh.f32 %v546_v9  ;;  %v548_v10 = vpop.eup %547 }
 0x1bb   :  { %v400_v14 = vmul.f32 0.6931472, %v548_v10 }
 0x1bd   :  { %v402_v18 = vrot.slane %v400_v14, 2 }
 0x1bf   :  { %v404_v19 = vsub.f32 %v398_v17, %v402_v18 }
 0x1c0   :  { %v550_v11 = vpop.eup %549 }
 0x1c1   :  { %v408_v12 = vmul.f32 %v550_v11, %v550_v11  ;;  %v496_v21 = vadd.f32 -0.9189385, %v404_v19 }
 0x1c3   :  { %v409_v15 = vsub.f32 1.0, %v408_v12 }
 0x1c5   :  { %v410_v16 = vadd.f32 1e-07, %v409_v15 }
 0x1c7   :  { %551 = vlog2.f32 %v410_v16 }
 0x1cd   :  { %v552_v20 = vpop.eup %551 }
 0x1ce   :  { %v412_v22 = vmul.f32 0.6931472, %v552_v20 }
 0x1d0   :  { %v413_v23 = vsub.f32 %v496_v21, %v412_v22 }
 0x1d2   :  { %v415_v24 = vrot.slane %v413_v23, 6 }
 0x1d4   :  { %v418_v25 = vsel %vm417_vm3, %v546_v9, %v415_v24 }
 0x1d5   :  { %419 = vst [vmem:[%s719_s6] sm:$0xf] %v418_v25 }

</bundles_post_ra>
